<compile_context>
chip_gen: v5e
topology: v5e:2x2
jax: 0.10.0
libtpu: 0.0.40
codegen_flags: <defaults>
</compile_context>

<pallas_src>
import jax
import jax.numpy as jnp
from jax.experimental import pallas as pl
from jax.experimental.pallas import tpu as pltpu


def _relu_kernel(x_ref, o_ref):
    # Elementwise ReLU on the whole tile (VPU).
    o_ref[...] = jnp.maximum(x_ref[...], jnp.zeros((), x_ref.dtype))


def _round_up(a, b):
    return (a + b - 1) // b * b


def _launch_2d(x2d):
    """Run the tiled ReLU over a 2D slab (rows, cols)."""
    rows, cols = x2d.shape
    itemsize = jnp.dtype(x2d.dtype).itemsize
    # Native sublane packing: 8 rows (f32), 16 (bf16/f16), 32 (int8/fp8).
    sublane = max(8, 32 // itemsize)

    # ~2 MiB blocks: double-buffered in+out (4 live buffers ~8 MiB) fits every
    # generation's scoped-VMEM defaults while amortizing the ~0.35 us/step
    # grid overhead. (v6e could use 4 MiB for ~1% more roofline; not worth the
    # per-chip branching here.)
    target_block_bytes = 2 * 1024 * 1024
    max_tile_rows = max(
        sublane,
        (target_block_bytes // (cols * itemsize)) // sublane * sublane,
    )

    # Cap at ceil(rows/2) so the grid has >= 2 parallel steps whenever rows
    # allow -> both v7x TensorCores get work (mem-bound => ~2x effective BW).
    desired_rows = _round_up(pl.cdiv(rows, 2), sublane)
    tile_rows = min(max_tile_rows, desired_rows)
    if tile_rows >= rows:
        tile_rows = rows  # single block; block dim == full array dim is legal.
    grid = pl.cdiv(rows, tile_rows)  # ragged final block is write-masked.

    block_bytes = tile_rows * cols * itemsize
    # 2 operands x 2 pipeline buffers + margin; stays well under v7x's 64 MiB.
    vmem_limit = min(64 << 20, max(16 << 20, 4 * block_bytes + (8 << 20)))

    return pl.pallas_call(
        _relu_kernel,
        out_shape=jax.ShapeDtypeStruct((rows, cols), x2d.dtype),
        grid_spec=pltpu.PrefetchScalarGridSpec(
            num_scalar_prefetch=0,
            grid=(grid,),
            in_specs=[pl.BlockSpec((tile_rows, cols), lambda i: (i, 0))],
            out_specs=pl.BlockSpec((tile_rows, cols), lambda i: (i, 0)),
        ),
        compiler_params=pltpu.CompilerParams(
            dimension_semantics=("parallel",),
            vmem_limit_bytes=vmem_limit,
        ),
    )(x2d)


def relu_pallas(x: jax.Array) -> jax.Array:
    """Elementwise ReLU; forward semantics of torch.nn.ReLU(inplace=True)."""
    orig_shape = x.shape
    total = int(x.size)
    if total == 0:
        return x

    # Path A: lane-dense slab, no padding, full-width (unmasked) stores.
    if total % 128 == 0:
        lanes = 1024
        while total % lanes:
            lanes //= 2  # 1024 -> 512 -> 256 -> 128 (guaranteed to divide)
        out2d = _launch_2d(x.reshape(total // lanes, lanes))
        return out2d.reshape(orig_shape)

    # Path B: fold trailing dims into the last axis until it is >= 128 wide
    # (e.g. 1x1232x14x14 -> (1232, 196)); block last dim == full array dim, so
    # only the final vreg of each row is a masked store. No pad, no slice.
    cols = 1
    i = x.ndim
    while i > 1 and cols < 128:
        i -= 1
        cols *= orig_shape[i]
    if cols >= 128:
        out2d = _launch_2d(x.reshape(total // cols, cols))
        return out2d.reshape(orig_shape)

    # Path C (rare fallback, e.g. short 1-D inputs): pad only up to the next
    # 128-lane multiple. Zero padding is safe for ReLU (max(0,0)=0); the tail
    # is sliced off. Never triggers for conv feature maps like this module's.
    padded = _round_up(total, 128)
    flat = jnp.pad(x.reshape(-1), (0, padded - total))
    lanes = 1024
    while padded % lanes:
        lanes //= 2
    out2d = _launch_2d(flat.reshape(padded // lanes, lanes))
    return out2d.reshape(-1)[:total].reshape(orig_shape)


if __name__ == "__main__":
    key = jax.random.PRNGKey(0)
    keys = jax.random.split(key, 5)

    # Small shape consistent with the module (Path A, lane-dense, grid=1).
    x_small = jax.random.normal(keys[0], (2, 4, 16, 16), dtype=jnp.float32)
    out = jax.block_until_ready(relu_pallas(x_small))
    assert out.shape == x_small.shape and out.dtype == x_small.dtype
    assert jnp.allclose(out, jnp.maximum(x_small, 0.0))

    # Actual module shape (1, 1232, 14, 14): Path B, no pad/slice, grid=2.
    x_mod = jax.random.normal(keys[1], (1, 1232, 14, 14), dtype=jnp.float32)
    out_mod = jax.block_until_ready(relu_pallas(x_mod))
    assert out_mod.shape == x_mod.shape and out_mod.dtype == x_mod.dtype
    assert jnp.allclose(out_mod, jnp.maximum(x_mod, 0.0))

    # Ragged final block (Path B with grid=2, partial last block write-mask).
    x_rag = jax.random.normal(keys[2], (1, 40, 14, 14), dtype=jnp.float32)
    out_rag = jax.block_until_ready(relu_pallas(x_rag))
    assert jnp.allclose(out_rag, jnp.maximum(x_rag, 0.0))

    # bf16 activations (dtype-aware sublane path).
    x_bf16 = jax.random.normal(keys[3], (2, 8, 16, 16), dtype=jnp.bfloat16)
    out_bf16 = jax.block_until_ready(relu_pallas(x_bf16))
    assert out_bf16.dtype == jnp.bfloat16
    assert jnp.allclose(out_bf16.astype(jnp.float32),
                        jnp.maximum(x_bf16, 0.0).astype(jnp.float32))

    # Tiny 1-D odd-length input (Path C fallback).
    x_vec = jax.random.normal(keys[4], (37,), dtype=jnp.float32)
    out_vec = jax.block_until_ready(relu_pallas(x_vec))
    assert jnp.allclose(out_vec, jnp.maximum(x_vec, 0.0))

    print("KERNEL_OK")
</pallas_src>

<mosaic_0001>
module attributes {stable_mosaic.version = 11 : i64} {
  func.func @_relu_kernel(%arg0: i32, %arg1: memref<2x1024xf32, #tpu.memory_space<vmem>>, %arg2: memref<2x1024xf32, #tpu.memory_space<vmem>>) attributes {dimension_semantics = [#tpu.dimension_semantics<parallel>], iteration_bounds = array<i64: 1>, scalar_prefetch = 0 : i64, scratch_operands = 0 : i64, tpu.core_type = #tpu.core_type<tc>, window_params = [{transform_indices = @transform_0, window_bounds = array<i64: 2, 1024>}, {transform_indices = @transform_1, window_bounds = array<i64: 2, 1024>}]} {
    %c0 = arith.constant 0 : index
    %c0_0 = arith.constant 0 : index
    %0 = vector.load %arg1[%c0, %c0_0] : memref<2x1024xf32, #tpu.memory_space<vmem>>, vector<2x1024xf32>
    %cst = arith.constant 0.000000e+00 : f32
    %1 = vector.broadcast %cst : f32 to vector<2x1024xf32>
    %2 = arith.maximumf %0, %1 : vector<2x1024xf32>
    %c0_1 = arith.constant 0 : index
    %c0_2 = arith.constant 0 : index
    %3 = vector.load %arg2[%c0_1, %c0_2] : memref<2x1024xf32, #tpu.memory_space<vmem>>, vector<2x1024xf32>
    tpu.vector_store %arg2[%c0_1, %c0_2], %2 {strides = array<i32>} : memref<2x1024xf32, #tpu.memory_space<vmem>>, vector<2x1024xf32>,
    return
  }
  func.func @transform_0(%arg0: i32) -> (i32, i32) {
    %c0_i32 = arith.constant 0 : i32
    %c0_i32_0 = arith.constant 0 : i32
    return %arg0, %c0_i32 : i32, i32
  }
  func.func @transform_1(%arg0: i32) -> (i32, i32) {
    %c0_i32 = arith.constant 0 : i32
    %c0_i32_0 = arith.constant 0 : i32
    return %arg0, %c0_i32 : i32, i32
  }
}

</mosaic_0001>

<bundles_post_ra>
// kernel: tpu_custom_call.1
= control target key start
LH: loop header
LB: loop body
LE: loop exit
PB: predicated region body
PF: predicated region fallthrough
CT: control target
= control target key end

     0   :  { %6 = vsyncpa [#allocation3], 0  ;;  %s118_s0 = inlined_call_operand.hbm [shape: f32[2,1024], index: 0, kind: input, shape index: {}]   ;;  %s119_s1 = inlined_call_operand.hbm [shape: f32[2,1024], index: 1, kind: output, shape index: {}]  }
   0x1   :  { %7 = vsyncpa [#allocation4], 0  ;;  %s13_s8 = sshll.u32 %s118_s0, 4  ;;  %s100_s9 = smov [#allocation2]   ;;  %s14_s8 = int_to_ptr.hbm [resolvable:$true] %s13_s8 }
   0x2   :  { %s15_s10 = sshll.u32 %s100_s9, 4  ;;  %s16_s10 = int_to_ptr.vmem [resolvable:$true] %s15_s10 }
   0x3   :  { %18 = dma.hbm_to_vmem [thread:$0]  %s14_s8, 256, %s16_s10, [#allocation3]  }
   0x4   :  { %96 = dma.done.wait [#allocation3], 256  }
   0x5   :  { %97 = vsyncadd [#allocation3], 4294967040  ;;  %s101_s11 = smov [#allocation5]   ;;  %s36_s15 = sshll.u32 %s119_s1, 4  ;;  %v23_v0 = vld [vmem:[#allocation2] sm:$0xff]  ;;  %v24_v1 = vld [vmem:[#allocation2 + $0x8] sm:$0xff]  ;;  %s37_s15 = int_to_ptr.hbm [resolvable:$true] %s36_s15 }
   0x6   :  { %s34_s12 = sshll.u32 %s101_s11, 4  ;;  %v25_v2 = vmax.f32 %v23_v0, 0.0  ;;  %v26_v3 = vmax.f32 %v24_v1, 0.0  ;;  %s35_s12 = int_to_ptr.vmem [resolvable:$true] %s34_s12 }
   0x8   :  { %27 = vst [vmem:[#allocation5] sm:$0xff] %v25_v2 }
   0x9   :  { %28 = vst [vmem:[#allocation5 + $0x8] sm:$0xff] %v26_v3 }
   0xa   :  { %39 = dma.vmem_to_hbm [thread:$0]  %s35_s12, 256, %s37_s15, [#allocation4]  }
   0xb   :  { %98 = dma.done.wait [#allocation4], 256  }
   0xc   :  { %99 = vsyncadd [#allocation4], 4294967040 }
   0xd   :  { %44 = vsyncpa [#allocation3], 1 }
   0xe   :  { %45 = vsyncpa [#allocation4], 1 }

</bundles_post_ra>
